<compile_context>
chip_gen: v7x
topology: tpu7x:2x2x1
jax: 0.10.0
libtpu: 0.0.40
codegen_flags: <defaults>
</compile_context>

<pallas_src>
import functools

import jax
import jax.numpy as jnp
from jax.experimental import pallas as pl
from jax.experimental.pallas import tpu as pltpu

_LANES = 128
_VMEM_TILE_BUDGET = 24 * 1024 * 1024   # in+out double-buffered working set
_VMEM_LIMIT_BYTES = 40 * 1024 * 1024   # explicit scoped-VMEM limit (safe v5e/v6e/v7x)
_MAX_ROW_TILE = 2048


def layernorm_kernel(x_ref, alpha_ref, beta_ref, o_ref, *, group, d_model):
    """x_ref/o_ref: (TR, group*d_model); alpha_ref/beta_ref: (1, d_model) f32.

    Each 128-lane row holds `group` independent logical rows of width d_model
    (group == 1 when d_model >= 128 or packing is not possible).
    """
    eps = 1e-07
    alpha = alpha_ref[...]                      # (1, d_model), already f32
    beta = beta_ref[...]
    x = x_ref[...].astype(jnp.float32)          # single dense (TR, width) load

    for g in range(group):                      # statically unrolled (group is tiny)
        lo = g * d_model
        xg = x[:, lo:lo + d_model]                              # (TR, d_model)
        mean = jnp.mean(xg, axis=-1, keepdims=True)             # (TR, 1)
        centered = xg - mean
        # PyTorch .std(unbiased=False): population variance.
        var = jnp.mean(centered * centered, axis=-1, keepdims=True)
        inv = pl.reciprocal(jnp.sqrt(var) + eps, approx=False)  # (TR, 1) per-row
        o_ref[:, lo:lo + d_model] = (
            alpha * (centered * inv) + beta
        ).astype(o_ref.dtype)


def _pick_row_tile(n_rows, width, itemsize):
    # 2x double-buffered input + output tiles must fit the working-set budget.
    per_row_bytes = 4 * width * itemsize
    tile = min(_MAX_ROW_TILE, max(8, _VMEM_TILE_BUDGET // per_row_bytes))
    tile = max(8, (tile // 8) * 8)                       # sublane multiple
    tile = min(tile, ((n_rows + 7) // 8) * 8)            # don't exceed (rounded) rows
    return int(tile)


def layer_norm(x, alpha, beta):
    orig_shape = x.shape
    d_model = orig_shape[-1]
    rows = 1
    for s in orig_shape[:-1]:
        rows *= s

    # Params are tiny and resident: pre-cast to f32 once in the wrapper.
    alpha2 = alpha.reshape(1, d_model).astype(jnp.float32)
    beta2 = beta.reshape(1, d_model).astype(jnp.float32)

    # Lane-dense packing for small d_model: view (rows, d) as (rows/group, group*d).
    group = 1
    if d_model < _LANES and _LANES % d_model == 0 and rows % (_LANES // d_model) == 0:
        group = _LANES // d_model

    n_rows = rows // group
    width = group * d_model
    x2 = x.reshape(n_rows, width)          # contiguous reshape, no extra HBM pass

    row_tile = _pick_row_tile(n_rows, width, x.dtype.itemsize)
    grid = (pl.cdiv(n_rows, row_tile),)    # no pad copy: tail block is masked

    kernel = functools.partial(layernorm_kernel, group=group, d_model=d_model)

    out = pl.pallas_call(
        kernel,
        out_shape=jax.ShapeDtypeStruct((n_rows, width), x.dtype),
        grid_spec=pltpu.PrefetchScalarGridSpec(
            num_scalar_prefetch=0,
            grid=grid,
            in_specs=[
                pl.BlockSpec((row_tile, width), lambda i: (i, 0)),
                pl.BlockSpec((1, d_model), lambda i: (0, 0)),
                pl.BlockSpec((1, d_model), lambda i: (0, 0)),
            ],
            out_specs=pl.BlockSpec((row_tile, width), lambda i: (i, 0)),
        ),
        compiler_params=pltpu.CompilerParams(
            dimension_semantics=("parallel",),      # shards rows across TCs on v7x
            vmem_limit_bytes=_VMEM_LIMIT_BYTES,
        ),
    )(x2, alpha2, beta2)

    return out.reshape(orig_shape)


if __name__ == "__main__":
    key = jax.random.PRNGKey(0)
    batch, seq, d_model = 2, 8, 32
    x = jax.random.normal(key, (batch, seq, d_model), dtype=jnp.float32)

    # Deterministic parameter init matching nn.Parameter(torch.ones/zeros(d_model))
    alpha = jnp.ones((d_model,), dtype=jnp.float32)
    beta = jnp.zeros((d_model,), dtype=jnp.float32)

    out = layer_norm(x, alpha, beta)
    out = jax.block_until_ready(out)

    # Reference check in plain JAX (same semantics as the PyTorch module)
    eps = 1e-07
    mean = jnp.mean(x, axis=-1, keepdims=True)
    std = jnp.sqrt(jnp.mean((x - mean) ** 2, axis=-1, keepdims=True))
    ref = alpha * (x - mean) / (std + eps) + beta
    assert jnp.allclose(out, ref, atol=1e-5, rtol=1e-5), "mismatch vs reference"

    print("KERNEL_OK")
</pallas_src>

<mosaic_0001>
module attributes {stable_mosaic.version = 11 : i64} {
  func.func @layernorm_kernel(%arg0: i32, %arg1: memref<8x128xf32, #tpu.memory_space<vmem>>, %arg2: memref<1x32xf32, #tpu.memory_space<vmem>>, %arg3: memref<1x32xf32, #tpu.memory_space<vmem>>, %arg4: memref<8x128xf32, #tpu.memory_space<vmem>>) attributes {dimension_semantics = [#tpu.dimension_semantics<parallel>], iteration_bounds = array<i64: 1>, scalar_prefetch = 0 : i64, scratch_operands = 0 : i64, tpu.core_type = #tpu.core_type<tc>, window_params = [{transform_indices = @transform_0, window_bounds = array<i64: 8, 128>}, {pipeline_mode = #tpu.pipeline_mode<synchronous>, transform_indices = @transform_1, window_bounds = array<i64: 1, 32>}, {pipeline_mode = #tpu.pipeline_mode<synchronous>, transform_indices = @transform_2, window_bounds = array<i64: 1, 32>}, {transform_indices = @transform_3, window_bounds = array<i64: 8, 128>}]} {
    %c0 = arith.constant 0 : index
    %c0_0 = arith.constant 0 : index
    %0 = vector.load %arg2[%c0, %c0_0] : memref<1x32xf32, #tpu.memory_space<vmem>>, vector<1x32xf32>
    %c0_1 = arith.constant 0 : index
    %c0_2 = arith.constant 0 : index
    %1 = vector.load %arg3[%c0_1, %c0_2] : memref<1x32xf32, #tpu.memory_space<vmem>>, vector<1x32xf32>
    %c0_3 = arith.constant 0 : index
    %c0_4 = arith.constant 0 : index
    %2 = vector.load %arg1[%c0_3, %c0_4] : memref<8x128xf32, #tpu.memory_space<vmem>>, vector<8x128xf32>
    %3 = vector.extract_strided_slice %2 {offsets = [0, 0], sizes = [8, 32], strides = [1, 1]} : vector<8x128xf32> to vector<8x32xf32>
    %cst = arith.constant dense<0.000000e+00> : vector<8xf32>
    %4 = vector.multi_reduction <add>, %3, %cst [1] : vector<8x32xf32> to vector<8xf32>
    %5 = vector.shape_cast %4 : vector<8xf32> to vector<8x1xf32>
    %cst_5 = arith.constant 3.200000e+01 : f32
    %6 = vector.broadcast %cst_5 : f32 to vector<8x1xf32>
    %7 = arith.divf %5, %6 : vector<8x1xf32>
    %8 = vector.broadcast %7 : vector<8x1xf32> to vector<8x32xf32>
    %9 = arith.subf %3, %8 : vector<8x32xf32>
    %10 = arith.mulf %9, %9 : vector<8x32xf32>
    %cst_6 = arith.constant dense<0.000000e+00> : vector<8xf32>
    %11 = vector.multi_reduction <add>, %10, %cst_6 [1] : vector<8x32xf32> to vector<8xf32>
    %12 = vector.shape_cast %11 : vector<8xf32> to vector<8x1xf32>
    %cst_7 = arith.constant 3.200000e+01 : f32
    %13 = vector.broadcast %cst_7 : f32 to vector<8x1xf32>
    %14 = arith.divf %12, %13 : vector<8x1xf32>
    %15 = math.sqrt %14 : vector<8x1xf32>
    %cst_8 = arith.constant 1.000000e-07 : f32
    %16 = vector.broadcast %cst_8 : f32 to vector<8x1xf32>
    %17 = arith.addf %15, %16 : vector<8x1xf32>
    %18 = tpu.reciprocal %17 : vector<8x1xf32> -> vector<8x1xf32>
    %19 = vector.broadcast %18 : vector<8x1xf32> to vector<8x32xf32>
    %20 = arith.mulf %9, %19 : vector<8x32xf32>
    %21 = vector.broadcast %0 : vector<1x32xf32> to vector<8x32xf32>
    %22 = arith.mulf %21, %20 : vector<8x32xf32>
    %23 = vector.broadcast %1 : vector<1x32xf32> to vector<8x32xf32>
    %24 = arith.addf %22, %23 : vector<8x32xf32>
    %c0_9 = arith.constant 0 : index
    %c0_10 = arith.constant 0 : index
    %25 = vector.load %arg4[%c0_9, %c0_10] : memref<8x128xf32, #tpu.memory_space<vmem>>, vector<8x32xf32>
    tpu.vector_store %arg4[%c0_9, %c0_10], %24 {strides = array<i32>} : memref<8x128xf32, #tpu.memory_space<vmem>>, vector<8x32xf32>,
    %26 = vector.extract_strided_slice %2 {offsets = [0, 32], sizes = [8, 32], strides = [1, 1]} : vector<8x128xf32> to vector<8x32xf32>
    %cst_11 = arith.constant dense<0.000000e+00> : vector<8xf32>
    %27 = vector.multi_reduction <add>, %26, %cst_11 [1] : vector<8x32xf32> to vector<8xf32>
    %28 = vector.shape_cast %27 : vector<8xf32> to vector<8x1xf32>
    %cst_12 = arith.constant 3.200000e+01 : f32
    %29 = vector.broadcast %cst_12 : f32 to vector<8x1xf32>
    %30 = arith.divf %28, %29 : vector<8x1xf32>
    %31 = vector.broadcast %30 : vector<8x1xf32> to vector<8x32xf32>
    %32 = arith.subf %26, %31 : vector<8x32xf32>
    %33 = arith.mulf %32, %32 : vector<8x32xf32>
    %cst_13 = arith.constant dense<0.000000e+00> : vector<8xf32>
    %34 = vector.multi_reduction <add>, %33, %cst_13 [1] : vector<8x32xf32> to vector<8xf32>
    %35 = vector.shape_cast %34 : vector<8xf32> to vector<8x1xf32>
    %cst_14 = arith.constant 3.200000e+01 : f32
    %36 = vector.broadcast %cst_14 : f32 to vector<8x1xf32>
    %37 = arith.divf %35, %36 : vector<8x1xf32>
    %38 = math.sqrt %37 : vector<8x1xf32>
    %cst_15 = arith.constant 1.000000e-07 : f32
    %39 = vector.broadcast %cst_15 : f32 to vector<8x1xf32>
    %40 = arith.addf %38, %39 : vector<8x1xf32>
    %41 = tpu.reciprocal %40 : vector<8x1xf32> -> vector<8x1xf32>
    %42 = vector.broadcast %41 : vector<8x1xf32> to vector<8x32xf32>
    %43 = arith.mulf %32, %42 : vector<8x32xf32>
    %44 = vector.broadcast %0 : vector<1x32xf32> to vector<8x32xf32>
    %45 = arith.mulf %44, %43 : vector<8x32xf32>
    %46 = vector.broadcast %1 : vector<1x32xf32> to vector<8x32xf32>
    %47 = arith.addf %45, %46 : vector<8x32xf32>
    %c0_16 = arith.constant 0 : index
    %c32 = arith.constant 32 : index
    %48 = vector.load %arg4[%c0_16, %c32] : memref<8x128xf32, #tpu.memory_space<vmem>>, vector<8x32xf32>
    tpu.vector_store %arg4[%c0_16, %c32], %47 {strides = array<i32>} : memref<8x128xf32, #tpu.memory_space<vmem>>, vector<8x32xf32>,
    %49 = vector.extract_strided_slice %2 {offsets = [0, 64], sizes = [8, 32], strides = [1, 1]} : vector<8x128xf32> to vector<8x32xf32>
    %cst_17 = arith.constant dense<0.000000e+00> : vector<8xf32>
    %50 = vector.multi_reduction <add>, %49, %cst_17 [1] : vector<8x32xf32> to vector<8xf32>
    %51 = vector.shape_cast %50 : vector<8xf32> to vector<8x1xf32>
    %cst_18 = arith.constant 3.200000e+01 : f32
    %52 = vector.broadcast %cst_18 : f32 to vector<8x1xf32>
    %53 = arith.divf %51, %52 : vector<8x1xf32>
    %54 = vector.broadcast %53 : vector<8x1xf32> to vector<8x32xf32>
    %55 = arith.subf %49, %54 : vector<8x32xf32>
    %56 = arith.mulf %55, %55 : vector<8x32xf32>
    %cst_19 = arith.constant dense<0.000000e+00> : vector<8xf32>
    %57 = vector.multi_reduction <add>, %56, %cst_19 [1] : vector<8x32xf32> to vector<8xf32>
    %58 = vector.shape_cast %57 : vector<8xf32> to vector<8x1xf32>
    %cst_20 = arith.constant 3.200000e+01 : f32
    %59 = vector.broadcast %cst_20 : f32 to vector<8x1xf32>
    %60 = arith.divf %58, %59 : vector<8x1xf32>
    %61 = math.sqrt %60 : vector<8x1xf32>
    %cst_21 = arith.constant 1.000000e-07 : f32
    %62 = vector.broadcast %cst_21 : f32 to vector<8x1xf32>
    %63 = arith.addf %61, %62 : vector<8x1xf32>
    %64 = tpu.reciprocal %63 : vector<8x1xf32> -> vector<8x1xf32>
    %65 = vector.broadcast %64 : vector<8x1xf32> to vector<8x32xf32>
    %66 = arith.mulf %55, %65 : vector<8x32xf32>
    %67 = vector.broadcast %0 : vector<1x32xf32> to vector<8x32xf32>
    %68 = arith.mulf %67, %66 : vector<8x32xf32>
    %69 = vector.broadcast %1 : vector<1x32xf32> to vector<8x32xf32>
    %70 = arith.addf %68, %69 : vector<8x32xf32>
    %c0_22 = arith.constant 0 : index
    %c64 = arith.constant 64 : index
    %71 = vector.load %arg4[%c0_22, %c64] : memref<8x128xf32, #tpu.memory_space<vmem>>, vector<8x32xf32>
    tpu.vector_store %arg4[%c0_22, %c64], %70 {strides = array<i32>} : memref<8x128xf32, #tpu.memory_space<vmem>>, vector<8x32xf32>,
    %72 = vector.extract_strided_slice %2 {offsets = [0, 96], sizes = [8, 32], strides = [1, 1]} : vector<8x128xf32> to vector<8x32xf32>
    %cst_23 = arith.constant dense<0.000000e+00> : vector<8xf32>
    %73 = vector.multi_reduction <add>, %72, %cst_23 [1] : vector<8x32xf32> to vector<8xf32>
    %74 = vector.shape_cast %73 : vector<8xf32> to vector<8x1xf32>
    %cst_24 = arith.constant 3.200000e+01 : f32
    %75 = vector.broadcast %cst_24 : f32 to vector<8x1xf32>
    %76 = arith.divf %74, %75 : vector<8x1xf32>
    %77 = vector.broadcast %76 : vector<8x1xf32> to vector<8x32xf32>
    %78 = arith.subf %72, %77 : vector<8x32xf32>
    %79 = arith.mulf %78, %78 : vector<8x32xf32>
    %cst_25 = arith.constant dense<0.000000e+00> : vector<8xf32>
    %80 = vector.multi_reduction <add>, %79, %cst_25 [1] : vector<8x32xf32> to vector<8xf32>
    %81 = vector.shape_cast %80 : vector<8xf32> to vector<8x1xf32>
    %cst_26 = arith.constant 3.200000e+01 : f32
    %82 = vector.broadcast %cst_26 : f32 to vector<8x1xf32>
    %83 = arith.divf %81, %82 : vector<8x1xf32>
    %84 = math.sqrt %83 : vector<8x1xf32>
    %cst_27 = arith.constant 1.000000e-07 : f32
    %85 = vector.broadcast %cst_27 : f32 to vector<8x1xf32>
    %86 = arith.addf %84, %85 : vector<8x1xf32>
    %87 = tpu.reciprocal %86 : vector<8x1xf32> -> vector<8x1xf32>
    %88 = vector.broadcast %87 : vector<8x1xf32> to vector<8x32xf32>
    %89 = arith.mulf %78, %88 : vector<8x32xf32>
    %90 = vector.broadcast %0 : vector<1x32xf32> to vector<8x32xf32>
    %91 = arith.mulf %90, %89 : vector<8x32xf32>
    %92 = vector.broadcast %1 : vector<1x32xf32> to vector<8x32xf32>
    %93 = arith.addf %91, %92 : vector<8x32xf32>
    %c0_28 = arith.constant 0 : index
    %c96 = arith.constant 96 : index
    %94 = vector.load %arg4[%c0_28, %c96] : memref<8x128xf32, #tpu.memory_space<vmem>>, vector<8x32xf32>
    tpu.vector_store %arg4[%c0_28, %c96], %93 {strides = array<i32>} : memref<8x128xf32, #tpu.memory_space<vmem>>, vector<8x32xf32>,
    return
  }
  func.func @transform_0(%arg0: i32) -> (i32, i32) {
    %c0_i32 = arith.constant 0 : i32
    %c0_i32_0 = arith.constant 0 : i32
    return %arg0, %c0_i32 : i32, i32
  }
  func.func @transform_1(%arg0: i32) -> (i32, i32) {
    %c0_i32 = arith.constant 0 : i32
    %c0_i32_0 = arith.constant 0 : i32
    %c0_i32_1 = arith.constant 0 : i32
    return %c0_i32, %c0_i32_0 : i32, i32
  }
  func.func @transform_2(%arg0: i32) -> (i32, i32) {
    %c0_i32 = arith.constant 0 : i32
    %c0_i32_0 = arith.constant 0 : i32
    %c0_i32_1 = arith.constant 0 : i32
    return %c0_i32, %c0_i32_0 : i32, i32
  }
  func.func @transform_3(%arg0: i32) -> (i32, i32) {
    %c0_i32 = arith.constant 0 : i32
    %c0_i32_0 = arith.constant 0 : i32
    return %arg0, %c0_i32 : i32, i32
  }
}

</mosaic_0001>

<bundles_post_ra>
// kernel: tpu_custom_call.1
= control target key start
LH: loop header
LB: loop body
LE: loop exit
PB: predicated region body
PF: predicated region fallthrough
CT: control target
= control target key end

     0   :  { %8 = vsyncpa [#allocation3], 0  ;;  %s379_s0 = inlined_call_operand.hbm [shape: f32[4,128], index: 0, kind: input, shape index: {}]   ;;  %s380_s1 = inlined_call_operand.vmem [shape: f32[1,32], index: 1, kind: input, shape index: {}]   ;;  %s381_s2 = inlined_call_operand.vmem [shape: f32[1,32], index: 2, kind: input, shape index: {}]   ;;  %s382_s3 = inlined_call_operand.hbm [shape: f32[4,128], index: 3, kind: output, shape index: {}]  }
   0x1   :  { %9 = vsyncpa [#allocation4], 0 }
   0x2   :  { %14 = vsyncadd [#allocation3], 64  ;;  %s276_s12 = smov [#allocation2]   ;;  %s228_s16 = scalar_lea.hbm %s379_s0, 64 }
   0x3   :  { %s15_s13 = sshll.u32 %s276_s12, 4  ;;  %p229_p0 = scmp.ne.s32.totalorder %s379_s0, %s228_s16  ;;  %s16_s13 = int_to_ptr.vmem [resolvable:$true] %s15_s13 }
   0x4   :  { %p232_p1 = scmp.lt.u32.totalorder %s228_s16, %s379_s0 }
   0x6   :  { %p234_p2 = pnand %p232_p1, %p229_p0 }
   0x8   :  { %237 = shalt.err (!%p234_p2)
}
   0x9   :  { %s238_s21 = scalar_lea.vmem %s16_s13, 64  ;;  %s242_s22 = scalar_lea.vmem %s16_s13, 128 }
   0xa   :  { %p239_p3 = scmp.ne.s32.totalorder %s16_s13, %s238_s21  ;;  %p243_p4 = scmp.lt.s32.totalorder %s16_s13, %s16_s13 }
   0xb   :  { %p244_p5 = scmp.lt.s32.totalorder %s242_s22, %s238_s21 }
   0xd   :  { %p245_p6 = por %p244_p5, %p243_p4 }
   0xf   :  { %p246_p7 = pnand %p245_p6, %p239_p3 }
  0x11   :  { %249 = shalt.err (!%p246_p7)
}
  0x12   :  { %s277_s23 = smov 64   ;;  %s278_s24 = smov 4  }
  0x13   :  { %21 = dma.hbm_to_vmem [thread:$0]  %s379_s0, 64, %s16_s13, [#allocation3], %s277_s23, %s277_s23, %s278_s24  }
  0x14   :  { %272 = dma.done.wait [#allocation3], 128  }
  0x15   :  { %273 = vsyncadd [#allocation3], 4294967168  ;;  %v31_v0 = vld [vmem:[#allocation2] sm:$0xff]  ;;  %s279_s27 = smov 96   ;;  %s280_s28 = smov 32   ;;  %vm32_vm0 = vcmask 261120  }
  0x16   :  { %70 = vrot.lane.b32.xlu0 %v31_v0, %s279_s27  ;;  %148 = vrot.lane.b32.xlu1 %v31_v0, %s280_s28  ;;  %v33_v21 = vsel %vm32_vm0, %v31_v0, 0.0  ;;  %v204_v61 = vld [vmem:[%s380_s1] ss:$0 sm:$0xff]  ;;  %vm107_vm9 = vcmask 523520   ;;  %vm146_vm10 = vcmask 785920   ;;  %vm185_vm11 = vcmask 1048320  }
  0x17   :  { %v205_v63 = vld [vmem:[%s381_s2] ss:$0 sm:$0xff] }
  0x1a   :  { %109 = vrot.lane.b32.xlu0 %v31_v0, %s277_s23 }
  0x88   :  { %v71_v1 = vpop.permute.xlu0 %70  ;;  %v149_v4 = vpop.permute.xlu1 %148 }
  0x89   :  { %v73_v2 = vsel %vm32_vm0, %v71_v1, 0.0  ;;  %v151_v6 = vsel %vm32_vm0, %v149_v4, 0.0 }
  0x8a   :  { %74 = vadd.xlane.f32.xlu1 %v73_v2 }
  0x8c   :  { %v110_v3 = vpop.permute.xlu0 %109 }
  0x8d   :  { %v112_v5 = vsel %vm32_vm0, %v110_v3, 0.0 }
  0x8e   :  { %113 = vadd.xlane.f32.xlu0 %v112_v5 }
  0x92   :  { %152 = vadd.xlane.f32.xlu0 %v151_v6 }
 0x117   :  { %v75_v7 = vpop.xlane.xlu1 %74 }
 0x118   :  { %v76_v8 = vmul.f32 0.03125, %v75_v7 }
 0x11a   :  { %v323_v9 = vsub.f32 %v31_v0, %v76_v8 }
 0x11b   :  { %v114_v10 = vpop.xlane.xlu0 %113 }
 0x11c   :  { %v115_v11 = vmul.f32 0.03125, %v114_v10  ;;  %v78_v12 = vmul.f32 %v323_v9, %v323_v9 }
 0x11e   :  { %v327_v13 = vsub.f32 %v31_v0, %v115_v11  ;;  %80 = vrot.lane.b32.xlu1 %v78_v12, %s279_s27 }
 0x11f   :  { %v153_v14 = vpop.xlane.xlu0 %152 }
 0x120   :  { %v154_v15 = vmul.f32 0.03125, %v153_v14  ;;  %v117_v16 = vmul.f32 %v327_v13, %v327_v13 }
 0x122   :  { %v332_v17 = vsub.f32 %v31_v0, %v154_v15  ;;  %119 = vrot.lane.b32.xlu0 %v117_v16, %s277_s23 }
 0x124   :  { %v156_v18 = vmul.f32 %v332_v17, %v332_v17 }
 0x126   :  { %158 = vrot.lane.b32.xlu1 %v156_v18, %s280_s28 }
 0x190   :  { %v81_v19 = vpop.permute.xlu1 %80 }
 0x191   :  { %v83_v20 = vsel %vm32_vm0, %v81_v19, 0.0 }
 0x192   :  { %84 = vadd.xlane.f32.xlu1 %v83_v20 }
 0x194   :  { %v120_v22 = vpop.permute.xlu0 %119 }
 0x195   :  { %v122_v23 = vsel %vm32_vm0, %v120_v22, 0.0 }
 0x196   :  { %123 = vadd.xlane.f32.xlu0 %v122_v23  ;;  %34 = vadd.xlane.f32.xlu1 %v33_v21 }
 0x198   :  { %v159_v24 = vpop.permute.xlu1 %158 }
 0x199   :  { %v161_v25 = vsel %vm32_vm0, %v159_v24, 0.0 }
 0x19a   :  { %162 = vadd.xlane.f32.xlu0 %v161_v25 }
 0x21f   :  { %v85_v26 = vpop.xlane.xlu1 %84 }
 0x220   :  { %v86_v27 = vmul.f32 0.03125, %v85_v26 }
 0x222   :  { %212 = vrsqrt.f32 %v86_v27  ;;  %vm89_vm1 = vcmp.eq.f32.partialorder %v86_v27, inf  ;;  %v92_v39 = vand.u32 2147483648, %v86_v27  ;;  %vm91_vm2 = vcmp.eq.f32.partialorder %v86_v27, 0.0 }
 0x223   :  { %v124_v28 = vpop.xlane.xlu0 %123  ;;  %v35_v29 = vpop.xlane.xlu1 %34 }
 0x224   :  { %v125_v30 = vmul.f32 0.03125, %v124_v28  ;;  %v37_v31 = vmul.f32 0.03125, %v35_v29 }
 0x226   :  { %214 = vrsqrt.f32 %v125_v30  ;;  %v342_v32 = vsub.f32 %v31_v0, %v37_v31  ;;  %vm128_vm3 = vcmp.eq.f32.partialorder %v125_v30, inf  ;;  %v131_v45 = vand.u32 2147483648, %v125_v30 }
 0x227   :  { %v163_v33 = vpop.xlane.xlu0 %162  ;;  %vm130_vm4 = vcmp.eq.f32.partialorder %v125_v30, 0.0 }
 0x228   :  { %v164_v34 = vmul.f32 0.03125, %v163_v33  ;;  %v39_v35 = vmul.f32 %v342_v32, %v342_v32 }
 0x22a   :  { %216 = vrsqrt.f32 %v164_v34  ;;  %v40_v36 = vsel %vm32_vm0, %v39_v35, 0.0  ;;  %vm167_vm5 = vcmp.eq.f32.partialorder %v164_v34, inf  ;;  %v170_v51 = vand.u32 2147483648, %v164_v34 }
 0x22b   :  { %41 = vadd.xlane.f32.xlu0 %v40_v36  ;;  %vm169_vm6 = vcmp.eq.f32.partialorder %v164_v34, 0.0 }
 0x22c   :  { %v213_v37 = vpop.eup %212 }
 0x22d   :  { %v88_v38 = vmul.f32 %v213_v37, %v86_v27 }
 0x22f   :  { %v90_v40 = vsel %vm89_vm1, %v86_v27, %v88_v38 }
 0x230   :  { %v215_v41 = vpop.eup %214  ;;  %v93_v42 = vsel %vm91_vm2, %v92_v39, %v90_v40 }
 0x231   :  { %v127_v43 = vmul.f32 %v215_v41, %v125_v30  ;;  %v94_v44 = vadd.f32 1e-07, %v93_v42 }
 0x233   :  { %218 = vrcp.f32 %v94_v44  ;;  %v129_v46 = vsel %vm128_vm3, %v125_v30, %v127_v43 }
 0x234   :  { %v217_v47 = vpop.eup %216  ;;  %v132_v48 = vsel %vm130_vm4, %v131_v45, %v129_v46 }
 0x235   :  { %v166_v49 = vmul.f32 %v217_v47, %v164_v34  ;;  %v133_v50 = vadd.f32 1e-07, %v132_v48 }
 0x237   :  { %220 = vrcp.f32 %v133_v50  ;;  %v168_v52 = vsel %vm167_vm5, %v164_v34, %v166_v49 }
 0x238   :  { %v171_v53 = vsel %vm169_vm6, %v170_v51, %v168_v52 }
 0x239   :  { %v172_v54 = vadd.f32 1e-07, %v171_v53 }
 0x23b   :  { %222 = vrcp.f32 %v172_v54 }
 0x23d   :  { %v219_v55 = vpop.eup %218 }
 0x23e   :  { %v96_v56 = vmul.f32 %v219_v55, %v323_v9 }
 0x240   :  { %98 = vrot.lane.b32.xlu1 %v96_v56, %s279_s27 }
 0x241   :  { %v221_v57 = vpop.eup %220 }
 0x242   :  { %v135_v58 = vmul.f32 %v221_v57, %v327_v13 }
 0x244   :  { %137 = vrot.lane.b32.xlu0 %v135_v58, %s277_s23 }
 0x245   :  { %v223_v59 = vpop.eup %222 }
 0x246   :  { %v174_v60 = vmul.f32 %v223_v59, %v332_v17 }
 0x248   :  { %176 = vrot.lane.b32.xlu1 %v174_v60, %s280_s28 }
 0x2b2   :  { %v99_v62 = vpop.permute.xlu1 %98 }
 0x2b3   :  { %v101_v0 = vmul.f32 %v204_v61, %v99_v62 }
 0x2b5   :  { %v102_v1 = vadd.f32 %v205_v63, %v101_v0 }
 0x2b7   :  { %104 = vrot.lane.b32.xlu1 %v102_v1, %s280_s28 }
 0x2b8   :  { %v42_v2 = vpop.xlane.xlu0 %41 }
 0x2b9   :  { %v43_v3 = vmul.f32 0.03125, %v42_v2 }
 0x2ba   :  { %v177_v4 = vpop.permute.xlu1 %176 }
 0x2bb   :  { %224 = vrsqrt.f32 %v43_v3  ;;  %v179_v5 = vmul.f32 %v204_v61, %v177_v4  ;;  %vm46_vm7 = vcmp.eq.f32.partialorder %v43_v3, inf  ;;  %v49_v12 = vand.u32 2147483648, %v43_v3 }
 0x2bc   :  { %v138_v6 = vpop.permute.xlu0 %137  ;;  %vm48_vm8 = vcmp.eq.f32.partialorder %v43_v3, 0.0 }
 0x2bd   :  { %v140_v7 = vmul.f32 %v204_v61, %v138_v6  ;;  %v180_v8 = vadd.f32 %v205_v63, %v179_v5 }
 0x2bf   :  { %v141_v9 = vadd.f32 %v205_v63, %v140_v7  ;;  %182 = vrot.lane.b32.xlu1 %v180_v8, %s279_s27 }
 0x2c1   :  { %143 = vrot.lane.b32.xlu0 %v141_v9, %s277_s23 }
 0x2c5   :  { %v225_v10 = vpop.eup %224 }
 0x2c6   :  { %v45_v11 = vmul.f32 %v225_v10, %v43_v3 }
 0x2c8   :  { %v47_v13 = vsel %vm46_vm7, %v43_v3, %v45_v11 }
 0x2c9   :  { %v50_v14 = vsel %vm48_vm8, %v49_v12, %v47_v13 }
 0x2ca   :  { %v51_v15 = vadd.f32 1e-07, %v50_v14 }
 0x2cc   :  { %226 = vrcp.f32 %v51_v15 }
 0x2d6   :  { %v227_v16 = vpop.eup %226 }
 0x2d7   :  { %v53_v17 = vmul.f32 %v227_v16, %v342_v32 }
 0x2d9   :  { %v60_v18 = vmul.f32 %v204_v61, %v53_v17 }
 0x2db   :  { %v67_v19 = vadd.f32 %v205_v63, %v60_v18 }
 0x2dd   :  { %68 = vst.msk [vmem:[#allocation5] sm:$0xff] %vm32_vm0, %v67_v19 }
 0x329   :  { %v105_v20 = vpop.permute.xlu1 %104 }
 0x32a   :  { %108 = vst.msk [vmem:[#allocation5] sm:$0xff] %vm107_vm9, %v105_v20 }
 0x331   :  { %v183_v22 = vpop.permute.xlu1 %182 }
 0x333   :  { %v144_v21 = vpop.permute.xlu0 %143 }
 0x334   :  { %147 = vst.msk [vmem:[#allocation5] sm:$0xff] %vm146_vm10, %v144_v21 }
 0x335   :  { %186 = vst.msk [vmem:[#allocation5] sm:$0xff] %vm185_vm11, %v183_v22 }
 0x336   :  { %191 = vsyncadd [#allocation4], 64  ;;  %s281_s1 = smov [#allocation5]  }
 0x337   :  { %s192_s2 = sshll.u32 %s281_s1, 4  ;;  %s193_s2 = int_to_ptr.vmem [resolvable:$true] %s192_s2 }
 0x338   :  { %s250_s5 = scalar_lea.vmem %s193_s2, 64  ;;  %s254_s6 = scalar_lea.vmem %s193_s2, 128 }
 0x339   :  { %p251_p8 = scmp.ne.s32.totalorder %s193_s2, %s250_s5  ;;  %p255_p9 = scmp.lt.s32.totalorder %s193_s2, %s193_s2 }
 0x33a   :  { %p256_p10 = scmp.lt.s32.totalorder %s254_s6, %s250_s5 }
 0x33c   :  { %p257_p11 = por %p256_p10, %p255_p9 }
 0x33e   :  { %p258_p12 = pnand %p257_p11, %p251_p8 }
 0x340   :  { %261 = shalt.err (!%p258_p12)
}
 0x341   :  { %s262_s9 = scalar_lea.hbm %s382_s3, 64 }
 0x342   :  { %p263_p13 = scmp.ne.s32.totalorder %s382_s3, %s262_s9  ;;  %p266_p0 = scmp.lt.u32.totalorder %s262_s9, %s382_s3 }
 0x344   :  { %p268_p1 = pnand %p266_p0, %p263_p13 }
 0x346   :  { %271 = shalt.err (!%p268_p1)
}
 0x347   :  { %198 = dma.vmem_to_hbm [thread:$0]  %s193_s2, 64, %s382_s3, [#allocation4], %s277_s23, %s277_s23, %s278_s24  }
 0x348   :  { %274 = dma.done.wait [#allocation4], 128  }
 0x349   :  { %275 = vsyncadd [#allocation4], 4294967168 }
 0x34a   :  { %202 = vsyncpa [#allocation3], 1 }
 0x34b   :  { %203 = vsyncpa [#allocation4], 1 }

</bundles_post_ra>
